<compile_context>
chip_gen: v7x
topology: tpu7x:2x2x1
jax: 0.10.0
libtpu: 0.0.40
codegen_flags: <defaults>
</compile_context>

<pallas_src>
import functools

import jax
import jax.numpy as jnp
from jax.experimental import pallas as pl
from jax.experimental.pallas import tpu as pltpu


def find_multiple(n: int, k: int) -> int:
    if n % k == 0:
        return n
    return n + k - n % k


def _round_up(n: int, k: int) -> int:
    return ((n + k - 1) // k) * k


# ----------------------------------------------------------------------------
# Host-side (glue): group quantization mirroring group_quantize_tensor
# ----------------------------------------------------------------------------
def group_quantize_tensor(w, n_bit=4, groupsize=128):
    """w: (out_features, in_features) float32.

    Returns (w_int4, scales_and_zeros) where
      w_int4:            (out_features, in_features) int8 codes in [0, 15]
      scales_and_zeros:  (in_features // G, out_features, 2) float32
    """
    O, K = w.shape
    g = min(groupsize, K)
    assert K % g == 0
    to_quant = w.reshape(-1, g)
    max_val = to_quant.max(axis=1, keepdims=True)
    min_val = to_quant.min(axis=1, keepdims=True)
    max_int = 2 ** n_bit - 1
    scales = jnp.clip(max_val - min_val, 1e-6, None) / max_int
    zeros = min_val + scales * (2 ** (n_bit - 1))
    w_int = jnp.clip(jnp.round((to_quant - min_val) / scales), 0, max_int)
    w_int = w_int.reshape(O, K).astype(jnp.int8)
    scales = scales.reshape(O, K // g)
    zeros = zeros.reshape(O, K // g)
    # pack_scales_and_zeros: cat along last dim, then transpose(0,1)
    scales_and_zeros = jnp.stack([scales.T, zeros.T], axis=-1)  # (K//g, O, 2)
    return w_int, scales_and_zeros


def pack_int4_weight(codes_kn, groupsize):
    """codes_kn: (K, N) int8 codes in [0, 15] -> (K//2, N) int8, 2 codes/byte.

    Within each K-group of size G, code k (first half of the group) goes to
    the LOW nibble and code k + G//2 (second half of the same group) goes to
    the HIGH nibble of the same byte.  Unpacking therefore yields two
    K-contiguous half-group slabs -> no lane shuffles in the kernel.
    """
    K, N = codes_kn.shape
    G = groupsize
    assert K % G == 0 and G % 2 == 0
    h = G // 2
    c = codes_kn.astype(jnp.uint8).reshape(K // G, 2, h, N)
    lo = c[:, 0]                                       # first half of group
    hi = c[:, 1]                                       # second half of group
    packed = (lo | (hi << 4)).reshape(K // 2, N)       # uint8 bit pattern
    return jax.lax.bitcast_convert_type(packed, jnp.int8)


# ----------------------------------------------------------------------------
# Pallas kernel: unpack int4, bf16 MXU matmul, factored scale/zero, K-reduce
# ----------------------------------------------------------------------------
def _int4_linear_kernel(x_ref, wp_ref, s_ref, z_ref, o_ref, acc_ref, *,
                        groups_per_block, group_size):
    kstep = pl.program_id(2)

    @pl.when(kstep == 0)
    def _():
        acc_ref[...] = jnp.zeros_like(acc_ref)

    G = group_size
    h = G // 2
    acc = acc_ref[...]
    # Small, statically-unrolled loop over the quant groups in this K block.
    for g in range(groups_per_block):
        # Packed codes for local group g: (h, tn) int8, two 4-bit codes/byte.
        pk = wp_ref[g * h:(g + 1) * h, :].astype(jnp.int32)
        w_lo = ((pk & 0xF) - 8).astype(jnp.bfloat16)        # K [gG, gG+h)
        w_hi = (((pk >> 4) & 0xF) - 8).astype(jnp.bfloat16)  # K [gG+h, (g+1)G)
        w_g = jnp.concatenate([w_lo, w_hi], axis=0)          # (G, tn) bf16

        x_g = x_ref[:, g * G:(g + 1) * G]                    # (tm, G) f32
        # bf16 MXU matmul with f32 accumulation; (q - 8) is exact in bf16.
        partial = jnp.dot(x_g.astype(jnp.bfloat16), w_g,
                          preferred_element_type=jnp.float32)  # (tm, tn)
        x_sum = jnp.sum(x_g, axis=1, keepdims=True)            # (tm, 1) f32

        gi = kstep * groups_per_block + g                      # global group
        s_row = s_ref[pl.ds(gi, 1), :]                         # (1, tn)
        z_row = z_ref[pl.ds(gi, 1), :]
        # Factored dequant: acc += (x_g @ (q-8)) * s + rowsum(x_g) * z
        acc = acc + partial * s_row + x_sum * z_row
    acc_ref[...] = acc

    @pl.when(kstep == pl.num_programs(2) - 1)
    def _():
        o_ref[...] = acc_ref[...].astype(o_ref.dtype)


def _choose_k_tiling(K, G):
    """Number of groups per K block (tk = gpb * G)."""
    ng = K // G
    cands = [g for g in range(1, ng + 1)
             if ng % g == 0 and g * G <= 1024
             and (g * G) % 128 == 0 and ((g * G) // 2) % 8 == 0]
    if cands:
        return max(cands)
    return ng  # tk == K: full-extent block is always a legal BlockSpec


@functools.partial(jax.jit, static_argnames=("out_features", "groupsize"))
def linear_int4(x, wq_packed, scales, zeros, *, out_features, groupsize):
    """x: (..., K); wq_packed: (K//2, Np) int8; scales/zeros: (K//G, Np) f32.

    Np = round_up(out_features, 128) (padding done once at weight-prep time).
    """
    orig_shape = x.shape
    K = orig_shape[-1]
    N = out_features
    G = min(groupsize, K)
    n_groups = scales.shape[0]
    Np = wq_packed.shape[1]

    out_dtype = x.dtype
    x2 = x.reshape(-1, K).astype(jnp.float32)
    M = x2.shape[0]

    # --- tile selection -----------------------------------------------------
    if M <= 256:
        tm = max(_round_up(M, 8), 8)
        Mp = tm
    else:
        tm = 256
        Mp = _round_up(M, tm)
    tn = 512 if Np % 512 == 0 else (256 if Np % 256 == 0 else 128)
    gpb = _choose_k_tiling(K, G)
    tk = gpb * G

    if Mp != M:
        x2 = jnp.pad(x2, ((0, Mp - M), (0, 0)))

    kernel = functools.partial(_int4_linear_kernel,
                               groups_per_block=gpb, group_size=G)

    out = pl.pallas_call(
        kernel,
        out_shape=jax.ShapeDtypeStruct((Mp, Np), out_dtype),
        grid_spec=pltpu.PrefetchScalarGridSpec(
            num_scalar_prefetch=0,
            grid=(Mp // tm, Np // tn, K // tk),
            in_specs=[
                pl.BlockSpec((tm, tk), lambda i, j, k: (i, k)),        # x
                pl.BlockSpec((tk // 2, tn), lambda i, j, k: (k, j)),   # packed W
                pl.BlockSpec((n_groups, tn), lambda i, j, k: (0, j)),  # scales
                pl.BlockSpec((n_groups, tn), lambda i, j, k: (0, j)),  # zeros
            ],
            out_specs=pl.BlockSpec((tm, tn), lambda i, j, k: (i, j)),
            scratch_shapes=[pltpu.VMEM((tm, tn), jnp.float32)],
        ),
        compiler_params=pltpu.CompilerParams(
            dimension_semantics=("parallel", "parallel", "arbitrary"),
            vmem_limit_bytes=32 * 1024 * 1024,
        ),
    )(x2, wq_packed, scales, zeros)

    out = out[:M, :N]
    return out.reshape(orig_shape[:-1] + (N,))


# ----------------------------------------------------------------------------
# Module wrapper (mirrors WeightOnlyInt4Linear)
# ----------------------------------------------------------------------------
class WeightOnlyInt4Linear:
    def __init__(self, in_features, out_features, *, groupsize=128,
                 inner_k_tiles=8, weight_fp=None):
        self.padding = not (in_features % groupsize == 0
                            and in_features % (inner_k_tiles * 16) == 0)
        if self.padding:
            self.origin_in_features = in_features
            in_features = find_multiple(in_features, 1024)
        self.in_features = in_features
        self.out_features = out_features
        self.groupsize = groupsize
        assert out_features % 8 == 0, "require out_features % 8 == 0"
        assert in_features % (inner_k_tiles * 16) == 0

        if weight_fp is None:
            key = jax.random.PRNGKey(0)
            weight_fp = jax.random.normal(
                key, (out_features, in_features), dtype=jnp.float32)
        self.weight_fp = weight_fp  # reference checking only

        w_int4, scales_and_zeros = group_quantize_tensor(
            weight_fp, n_bit=4, groupsize=groupsize)
        self.scales_and_zeros = scales_and_zeros                # (K//G, N, 2)

        K, N = in_features, out_features
        G = min(groupsize, K)
        Np = _round_up(N, 128)                                  # lane-dense N
        codes_kn = jnp.transpose(w_int4, (1, 0))                # (K, N) 0..15
        scales = scales_and_zeros[..., 0]                       # (K//G, N)
        zeros = scales_and_zeros[..., 1]
        if Np != N:
            codes_kn = jnp.pad(codes_kn, ((0, 0), (0, Np - N)))
            scales = jnp.pad(scales, ((0, 0), (0, Np - N)))
            zeros = jnp.pad(zeros, ((0, 0), (0, Np - N)))
        self.weight_q_packed = pack_int4_weight(codes_kn, G)    # (K//2, Np)
        self.scales = scales                                    # (K//G, Np)
        self.zeros = zeros                                      # (K//G, Np)
        self._codes_kn = codes_kn[:, :N].astype(jnp.float32)    # ref check

    def __call__(self, x):
        if self.padding:
            pad = self.in_features - self.origin_in_features
            x = jnp.pad(x, [(0, 0)] * (x.ndim - 1) + [(0, pad)])
        return linear_int4(x, self.weight_q_packed, self.scales, self.zeros,
                           out_features=self.out_features,
                           groupsize=self.groupsize)

    def reference(self, x):
        """Pure-JAX f32 reference of the same dequantized matmul."""
        if self.padding:
            pad = self.in_features - self.origin_in_features
            x = jnp.pad(x, [(0, 0)] * (x.ndim - 1) + [(0, pad)])
        G = min(self.groupsize, self.in_features)
        s = jnp.repeat(self.scales[:, :self.out_features], G, axis=0)  # (K, N)
        z = jnp.repeat(self.zeros[:, :self.out_features], G, axis=0)   # (K, N)
        w_deq = (self._codes_kn - 8.0) * s + z
        return x @ w_deq


if __name__ == "__main__":
    # Small shapes consistent with the module's constraints:
    #   in_features % (inner_k_tiles*16 = 128) == 0, out_features % 8 == 0.
    in_features, out_features, groupsize = 256, 128, 128
    batch, seq = 2, 8

    layer = WeightOnlyInt4Linear(in_features, out_features,
                                 groupsize=groupsize, inner_k_tiles=8)

    x = jax.random.normal(jax.random.PRNGKey(0),
                          (batch, seq, in_features), dtype=jnp.float32)

    out = layer(x)
    jax.block_until_ready(out)

    ref = layer.reference(x)
    assert out.shape == (batch, seq, out_features)
    # bf16 MXU path: activations are cast to bf16 ((q-8) weights are exact),
    # accumulation stays f32 -> tolerance looser than a pure-f32 kernel.
    max_err = float(jnp.max(jnp.abs(out - ref)))
    assert jnp.allclose(out, ref, atol=5e-1, rtol=5e-2), max_err

    print("KERNEL_OK")
</pallas_src>

<mosaic_0001>
module attributes {stable_mosaic.version = 11 : i64} {
  func.func @_int4_linear_kernel(%arg0: i32, %arg1: i32, %arg2: i32, %arg3: memref<16x256xf32, #tpu.memory_space<vmem>>, %arg4: memref<128x128xi8, #tpu.memory_space<vmem>>, %arg5: memref<2x128xf32, #tpu.memory_space<vmem>>, %arg6: memref<2x128xf32, #tpu.memory_space<vmem>>, %arg7: memref<16x128xf32, #tpu.memory_space<vmem>>, %arg8: memref<16x128xf32, #tpu.memory_space<vmem>>) attributes {dimension_semantics = [#tpu.dimension_semantics<parallel>, #tpu.dimension_semantics<parallel>, #tpu.dimension_semantics<arbitrary>], iteration_bounds = array<i64: 1, 1, 1>, scalar_prefetch = 0 : i64, scratch_operands = 1 : i64, tpu.core_type = #tpu.core_type<tc>, window_params = [{transform_indices = @transform_0, window_bounds = array<i64: 16, 256>}, {transform_indices = @transform_1, window_bounds = array<i64: 128, 128>}, {transform_indices = @transform_2, window_bounds = array<i64: 2, 128>}, {transform_indices = @transform_3, window_bounds = array<i64: 2, 128>}, {transform_indices = @transform_4, window_bounds = array<i64: 16, 128>}]} {
    %c0_i32 = arith.constant 0 : i32
    %0 = arith.cmpi eq, %arg2, %c0_i32 : i32
    %1 = arith.extui %0 : i1 to i32
    %c0_i32_0 = arith.constant 0 : i32
    %2 = arith.cmpi ne, %1, %c0_i32_0 : i32
    scf.if %2 {
      %cst_28 = arith.constant 0.000000e+00 : f32
      %74 = vector.broadcast %cst_28 : f32 to vector<16x128xf32>
      %c0_29 = arith.constant 0 : index
      %c0_30 = arith.constant 0 : index
      %75 = vector.load %arg8[%c0_29, %c0_30] : memref<16x128xf32, #tpu.memory_space<vmem>>, vector<16x128xf32>
      tpu.vector_store %arg8[%c0_29, %c0_30], %74 {strides = array<i32>} : memref<16x128xf32, #tpu.memory_space<vmem>>, vector<16x128xf32>,
    } else {
    }
    %c0 = arith.constant 0 : index
    %c0_1 = arith.constant 0 : index
    %3 = vector.load %arg8[%c0, %c0_1] : memref<16x128xf32, #tpu.memory_space<vmem>>, vector<16x128xf32>
    %c0_2 = arith.constant 0 : index
    %c0_3 = arith.constant 0 : index
    %4 = vector.load %arg4[%c0_2, %c0_3] : memref<128x128xi8, #tpu.memory_space<vmem>>, vector<64x128xi8>
    %5 = arith.extsi %4 : vector<64x128xi8> to vector<64x128xi32>
    %c15_i32 = arith.constant 15 : i32
    %6 = vector.broadcast %c15_i32 : i32 to vector<64x128xi32>
    %7 = arith.andi %5, %6 : vector<64x128xi32>
    %c8_i32 = arith.constant 8 : i32
    %8 = vector.broadcast %c8_i32 : i32 to vector<64x128xi32>
    %9 = arith.subi %7, %8 : vector<64x128xi32>
    %10 = arith.sitofp %9 : vector<64x128xi32> to vector<64x128xbf16>
    %c4_i32 = arith.constant 4 : i32
    %11 = vector.broadcast %c4_i32 : i32 to vector<64x128xi32>
    %12 = arith.shrsi %5, %11 : vector<64x128xi32>
    %c15_i32_4 = arith.constant 15 : i32
    %13 = vector.broadcast %c15_i32_4 : i32 to vector<64x128xi32>
    %14 = arith.andi %12, %13 : vector<64x128xi32>
    %c8_i32_5 = arith.constant 8 : i32
    %15 = vector.broadcast %c8_i32_5 : i32 to vector<64x128xi32>
    %16 = arith.subi %14, %15 : vector<64x128xi32>
    %17 = arith.sitofp %16 : vector<64x128xi32> to vector<64x128xbf16>
    %18 = tpu.concatenate %10, %17 in 0 : vector<64x128xbf16>, vector<64x128xbf16> -> vector<128x128xbf16>
    %c0_6 = arith.constant 0 : index
    %c0_7 = arith.constant 0 : index
    %19 = vector.load %arg3[%c0_6, %c0_7] : memref<16x256xf32, #tpu.memory_space<vmem>>, vector<16x128xf32>
    %20 = arith.truncf %19 : vector<16x128xf32> to vector<16x128xbf16>
    %cst = arith.constant dense<0.000000e+00> : vector<16x128xf32>
    %21 = tpu.matmul %20, %18, %cst {dimension_numbers = #tpu.dot_dimension_numbers<[1], [0], [0], [1], [0, 0, 1, 1], [], []>} : vector<16x128xbf16>, vector<128x128xbf16>, vector<16x128xf32> -> vector<16x128xf32>
    %cst_8 = arith.constant dense<0.000000e+00> : vector<16xf32>
    %22 = vector.multi_reduction <add>, %19, %cst_8 [1] : vector<16x128xf32> to vector<16xf32>
    %23 = vector.shape_cast %22 : vector<16xf32> to vector<16x1xf32>
    %c2_i32 = arith.constant 2 : i32
    %24 = arith.muli %arg2, %c2_i32 : i32
    %c0_i32_9 = arith.constant 0 : i32
    %25 = arith.addi %24, %c0_i32_9 : i32
    %26 = arith.index_cast %25 : i32 to index
    %c0_10 = arith.constant 0 : index
    %27 = vector.load %arg5[%26, %c0_10] : memref<2x128xf32, #tpu.memory_space<vmem>>, vector<1x128xf32>
    %28 = arith.index_cast %25 : i32 to index
    %c0_11 = arith.constant 0 : index
    %29 = vector.load %arg6[%28, %c0_11] : memref<2x128xf32, #tpu.memory_space<vmem>>, vector<1x128xf32>
    %30 = vector.broadcast %27 : vector<1x128xf32> to vector<16x128xf32>
    %31 = arith.mulf %21, %30 : vector<16x128xf32>
    %32 = arith.addf %3, %31 : vector<16x128xf32>
    %33 = vector.broadcast %23 : vector<16x1xf32> to vector<16x128xf32>
    %34 = vector.broadcast %29 : vector<1x128xf32> to vector<16x128xf32>
    %35 = arith.mulf %33, %34 : vector<16x128xf32>
    %36 = arith.addf %32, %35 : vector<16x128xf32>
    %c64 = arith.constant 64 : index
    %c0_12 = arith.constant 0 : index
    %37 = vector.load %arg4[%c64, %c0_12] : memref<128x128xi8, #tpu.memory_space<vmem>>, vector<64x128xi8>
    %38 = arith.extsi %37 : vector<64x128xi8> to vector<64x128xi32>
    %c15_i32_13 = arith.constant 15 : i32
    %39 = vector.broadcast %c15_i32_13 : i32 to vector<64x128xi32>
    %40 = arith.andi %38, %39 : vector<64x128xi32>
    %c8_i32_14 = arith.constant 8 : i32
    %41 = vector.broadcast %c8_i32_14 : i32 to vector<64x128xi32>
    %42 = arith.subi %40, %41 : vector<64x128xi32>
    %43 = arith.sitofp %42 : vector<64x128xi32> to vector<64x128xbf16>
    %c4_i32_15 = arith.constant 4 : i32
    %44 = vector.broadcast %c4_i32_15 : i32 to vector<64x128xi32>
    %45 = arith.shrsi %38, %44 : vector<64x128xi32>
    %c15_i32_16 = arith.constant 15 : i32
    %46 = vector.broadcast %c15_i32_16 : i32 to vector<64x128xi32>
    %47 = arith.andi %45, %46 : vector<64x128xi32>
    %c8_i32_17 = arith.constant 8 : i32
    %48 = vector.broadcast %c8_i32_17 : i32 to vector<64x128xi32>
    %49 = arith.subi %47, %48 : vector<64x128xi32>
    %50 = arith.sitofp %49 : vector<64x128xi32> to vector<64x128xbf16>
    %51 = tpu.concatenate %43, %50 in 0 : vector<64x128xbf16>, vector<64x128xbf16> -> vector<128x128xbf16>
    %c0_18 = arith.constant 0 : index
    %c128 = arith.constant 128 : index
    %52 = vector.load %arg3[%c0_18, %c128] : memref<16x256xf32, #tpu.memory_space<vmem>>, vector<16x128xf32>
    %53 = arith.truncf %52 : vector<16x128xf32> to vector<16x128xbf16>
    %cst_19 = arith.constant dense<0.000000e+00> : vector<16x128xf32>
    %54 = tpu.matmul %53, %51, %cst_19 {dimension_numbers = #tpu.dot_dimension_numbers<[1], [0], [0], [1], [0, 0, 1, 1], [], []>} : vector<16x128xbf16>, vector<128x128xbf16>, vector<16x128xf32> -> vector<16x128xf32>
    %cst_20 = arith.constant dense<0.000000e+00> : vector<16xf32>
    %55 = vector.multi_reduction <add>, %52, %cst_20 [1] : vector<16x128xf32> to vector<16xf32>
    %56 = vector.shape_cast %55 : vector<16xf32> to vector<16x1xf32>
    %c2_i32_21 = arith.constant 2 : i32
    %57 = arith.muli %arg2, %c2_i32_21 : i32
    %c1_i32 = arith.constant 1 : i32
    %58 = arith.addi %57, %c1_i32 : i32
    %59 = arith.index_cast %58 : i32 to index
    %c0_22 = arith.constant 0 : index
    %60 = vector.load %arg5[%59, %c0_22] : memref<2x128xf32, #tpu.memory_space<vmem>>, vector<1x128xf32>
    %61 = arith.index_cast %58 : i32 to index
    %c0_23 = arith.constant 0 : index
    %62 = vector.load %arg6[%61, %c0_23] : memref<2x128xf32, #tpu.memory_space<vmem>>, vector<1x128xf32>
    %63 = vector.broadcast %60 : vector<1x128xf32> to vector<16x128xf32>
    %64 = arith.mulf %54, %63 : vector<16x128xf32>
    %65 = arith.addf %36, %64 : vector<16x128xf32>
    %66 = vector.broadcast %56 : vector<16x1xf32> to vector<16x128xf32>
    %67 = vector.broadcast %62 : vector<1x128xf32> to vector<16x128xf32>
    %68 = arith.mulf %66, %67 : vector<16x128xf32>
    %69 = arith.addf %65, %68 : vector<16x128xf32>
    %c0_24 = arith.constant 0 : index
    %c0_25 = arith.constant 0 : index
    %70 = vector.load %arg8[%c0_24, %c0_25] : memref<16x128xf32, #tpu.memory_space<vmem>>, vector<16x128xf32>
    tpu.vector_store %arg8[%c0_24, %c0_25], %69 {strides = array<i32>} : memref<16x128xf32, #tpu.memory_space<vmem>>, vector<16x128xf32>,
    %c0_i32_26 = arith.constant 0 : i32
    %71 = arith.cmpi eq, %arg2, %c0_i32_26 : i32
    %72 = arith.extui %71 : i1 to i32
    %c0_i32_27 = arith.constant 0 : i32
    %73 = arith.cmpi ne, %72, %c0_i32_27 : i32
    scf.if %73 {
      %c0_28 = arith.constant 0 : index
      %c0_29 = arith.constant 0 : index
      %74 = vector.load %arg8[%c0_28, %c0_29] : memref<16x128xf32, #tpu.memory_space<vmem>>, vector<16x128xf32>
      %c0_30 = arith.constant 0 : index
      %c0_31 = arith.constant 0 : index
      %75 = vector.load %arg7[%c0_30, %c0_31] : memref<16x128xf32, #tpu.memory_space<vmem>>, vector<16x128xf32>
      tpu.vector_store %arg7[%c0_30, %c0_31], %74 {strides = array<i32>} : memref<16x128xf32, #tpu.memory_space<vmem>>, vector<16x128xf32>,
    } else {
    }
    return
  }
  func.func @transform_0(%arg0: i32, %arg1: i32, %arg2: i32) -> (i32, i32) {
    %c0_i32 = arith.constant 0 : i32
    return %arg0, %arg2 : i32, i32
  }
  func.func @transform_1(%arg0: i32, %arg1: i32, %arg2: i32) -> (i32, i32) {
    %c0_i32 = arith.constant 0 : i32
    return %arg2, %arg1 : i32, i32
  }
  func.func @transform_2(%arg0: i32, %arg1: i32, %arg2: i32) -> (i32, i32) {
    %c0_i32 = arith.constant 0 : i32
    %c0_i32_0 = arith.constant 0 : i32
    return %c0_i32, %arg1 : i32, i32
  }
  func.func @transform_3(%arg0: i32, %arg1: i32, %arg2: i32) -> (i32, i32) {
    %c0_i32 = arith.constant 0 : i32
    %c0_i32_0 = arith.constant 0 : i32
    return %c0_i32, %arg1 : i32, i32
  }
  func.func @transform_4(%arg0: i32, %arg1: i32, %arg2: i32) -> (i32, i32) {
    %c0_i32 = arith.constant 0 : i32
    return %arg0, %arg1 : i32, i32
  }
}

</mosaic_0001>

<bundles_post_ra>
// kernel: linear_int4.1
= control target key start
LH: loop header
LB: loop body
LE: loop exit
PB: predicated region body
PF: predicated region fallthrough
CT: control target
= control target key end

     0   :  { %9 = vsyncpa [#allocation4], 0  ;;  %s757_s0 = inlined_call_operand.hbm [shape: f32[16,256], index: 0, kind: input, shape index: {}]   ;;  %s758_s1 = inlined_call_operand.hbm [shape: s8[128,128], index: 1, kind: input, shape index: {}]   ;;  %s759_s2 = inlined_call_operand.vmem [shape: f32[2,128], index: 2, kind: input, shape index: {}]   ;;  %s760_s3 = inlined_call_operand.vmem [shape: f32[2,128], index: 3, kind: input, shape index: {}]   ;;  %s761_s4 = inlined_call_operand.hbm [shape: f32[16,128], index: 4, kind: output, shape index: {}]  }
   0x1   :  { %10 = vsyncpa [#allocation7], 0 }
   0x2   :  { %11 = vsyncpa [#allocation5], 0  ;;  %s547_s15 = smov [#allocation3]   ;;  %s475_s19 = scalar_lea.hbm %s757_s0, 512 }
   0x3   :  { %s17_s16 = sshll.u32 %s547_s15, 4  ;;  %p476_p0 = scmp.ne.s32.totalorder %s757_s0, %s475_s19  ;;  %s18_s16 = int_to_ptr.vmem [resolvable:$true] %s17_s16 }
   0x4   :  { %p479_p1 = scmp.lt.u32.totalorder %s475_s19, %s757_s0 }
   0x6   :  { %p481_p2 = pnand %p479_p1, %p476_p0 }
   0x8   :  { %484 = shalt.err (!%p481_p2)
}
   0x9   :  { %s485_s24 = scalar_lea.vmem %s18_s16, 512  ;;  %p490_p4 = scmp.lt.s32.totalorder %s18_s16, %s18_s16 }
   0xa   :  { %p486_p3 = scmp.ne.s32.totalorder %s18_s16, %s485_s24  ;;  %p491_p5 = scmp.lt.s32.totalorder %s485_s24, %s485_s24 }
   0xc   :  { %p492_p6 = por %p491_p5, %p490_p4 }
   0xe   :  { %p493_p7 = pnand %p492_p6, %p486_p3 }
  0x10   :  { %496 = shalt.err (!%p493_p7)
}
  0x11   :  { %s548_s25 = smov 256   ;;  %s549_s26 = smov 16  }
  0x12   :  { %23 = dma.hbm_to_vmem [thread:$0]  %s757_s0, 512, %s18_s16, [#allocation4], %s548_s25, %s548_s25, %s549_s26  }
  0x13   :  { %s550_s29 = smov [#allocation6]   ;;  %s497_s7 = scalar_lea.hbm %s758_s1, 512 }
  0x14   :  { %s29_s30 = sshll.u32 %s550_s29, 4  ;;  %p498_p8 = scmp.ne.s32.totalorder %s758_s1, %s497_s7  ;;  %s30_s30 = int_to_ptr.vmem [resolvable:$true] %s29_s30 }
  0x15   :  { %p501_p9 = scmp.lt.u32.totalorder %s497_s7, %s758_s1 }
  0x17   :  { %p503_p10 = pnand %p501_p9, %p498_p8 }
  0x19   :  { %506 = shalt.err (!%p503_p10)
}
  0x1a   :  { %s507_s12 = scalar_lea.vmem %s30_s30, 512  ;;  %p512_p12 = scmp.lt.s32.totalorder %s30_s30, %s30_s30 }
  0x1b   :  { %p508_p11 = scmp.ne.s32.totalorder %s30_s30, %s507_s12  ;;  %p513_p13 = scmp.lt.s32.totalorder %s507_s12, %s507_s12 }
  0x1d   :  { %p514_p0 = por %p513_p13, %p512_p12 }
  0x1f   :  { %p515_p1 = pnand %p514_p0, %p508_p11 }
  0x21   :  { %518 = shalt.err (!%p515_p1)
}
  0x22   :  { %s551_s0 = smov 128   ;;  %s552_s13 = smov 8  }
  0x23   :  { %35 = dma.hbm_to_vmem [thread:$0]  %s758_s1, 512, %s30_s30, [#allocation7], %s551_s0, %s551_s0, %s552_s13  }
  0x24   :  { %541 = dma.done.wait [#allocation4], 512  }
  0x25   :  { %542 = vsyncadd [#allocation4], 4294966784 }
  0x26   :  { %543 = dma.done.wait [#allocation7], 512  }
  0x27   :  { %544 = vsyncadd [#allocation7], 4294966784  ;;  %v553_v0 = vmov 0.0   ;;  %vm554_vm0 = vmmov 0   ;;  %v612_v1 = vld [vmem:[#allocation6] sm:$0xff]  ;;  %v614_v2 = vld [vmem:[#allocation6 + $0x10] sm:$0xff] }
  0x28   :  { %426 = vmatprep.subr.bf16.mxu0 %v553_v0  ;;  %446 = vmatprep.subr.bf16.mxu1 %v553_v0  ;;  %v57_v3 = vunpack.c.0.s8 %v612_v1  ;;  %v58_v4 = vunpack.c.1.s8 %v612_v1  ;;  %v200_v5 = vunpack.c.0.s8 %v614_v2  ;;  %v201_v6 = vunpack.c.1.s8 %v614_v2  ;;  %v620_v7 = vld [vmem:[#allocation3] sm:$0xff]  ;;  %v626_v12 = vld [vmem:[#allocation3 + $0x8] sm:$0xff]  ;;  %v646_v25 = vld [vmem:[#allocation3 + $0x10] sm:$0xff] }
  0x29   :  { %442 = vmatprep.mubr.msk.bf16.mxu0 %vm554_vm0, %v553_v0  ;;  %462 = vmatprep.mubr.msk.bf16.mxu1 %vm554_vm0, %v553_v0  ;;  %v59_v8 = vunpack.c.2.s8 %v612_v1  ;;  %v60_v9 = vunpack.c.3.s8 %v612_v1  ;;  %v202_v10 = vunpack.c.2.s8 %v614_v2  ;;  %v203_v11 = vunpack.c.3.s8 %v614_v2  ;;  %v648_v30 = vld [vmem:[#allocation6 + $0x8] sm:$0xff]  ;;  %v650_v31 = vld [vmem:[#allocation3 + $0x18] sm:$0xff] }
  0x2a   :  { %173 = vadd.xlane.f32.xlu0 %v620_v7  ;;  %v65_v13 = vand.u32 15, %v57_v3  ;;  %v66_v14 = vand.u32 15, %v58_v4  ;;  %v208_v15 = vand.u32 15, %v200_v5  ;;  %v209_v16 = vand.u32 15, %v201_v6  ;;  %316 = vadd.xlane.f32.xlu1 %v626_v12  ;;  %v653_v36 = vld [vmem:[#allocation6 + $0x18] sm:$0xff] }
  0x2b   :  { %v67_v17 = vand.u32 15, %v59_v8  ;;  %v68_v18 = vand.u32 15, %v60_v9  ;;  %v210_v19 = vand.u32 15, %v202_v10  ;;  %v211_v20 = vand.u32 15, %v203_v11 }
  0x2c   :  { %v370_v21 = vadd.s32 4294967288, %v65_v13  ;;  %v371_v22 = vadd.s32 4294967288, %v66_v14  ;;  %v388_v23 = vadd.s32 4294967288, %v208_v15  ;;  %v389_v24 = vadd.s32 4294967288, %v209_v16 }
  0x2d   :  { %v372_v26 = vadd.s32 4294967288, %v67_v17  ;;  %v373_v27 = vadd.s32 4294967288, %v68_v18  ;;  %v390_v28 = vadd.s32 4294967288, %v210_v19  ;;  %v391_v29 = vadd.s32 4294967288, %v211_v20 }
  0x2e   :  { %175 = vadd.xlane.f32.xlu0 %v646_v25  ;;  %v81_v32 = vcvt.s32.f32 %v370_v21  ;;  %v82_v33 = vcvt.s32.f32 %v371_v22  ;;  %v224_v34 = vcvt.s32.f32 %v388_v23  ;;  %v225_v35 = vcvt.s32.f32 %v389_v24  ;;  %318 = vadd.xlane.f32.xlu1 %v650_v31 }
  0x2f   :  { %v83_v37 = vcvt.s32.f32 %v372_v26  ;;  %v84_v38 = vcvt.s32.f32 %v373_v27  ;;  %v226_v39 = vcvt.s32.f32 %v390_v28  ;;  %v227_v40 = vcvt.s32.f32 %v391_v29 }
  0x30   :  { %v89_v41 = vpack.c.bf16 %v82_v33, %v81_v32  ;;  %v232_v42 = vpack.c.bf16 %v225_v35, %v224_v34  ;;  %v61_v43 = vunpack.c.0.s8 %v648_v30  ;;  %v62_v44 = vunpack.c.1.s8 %v648_v30 }
  0x31   :  { %v90_v45 = vpack.c.bf16 %v84_v38, %v83_v37  ;;  %v233_v46 = vpack.c.bf16 %v227_v40, %v226_v39  ;;  %v204_v47 = vunpack.c.0.s8 %v653_v36  ;;  %v205_v48 = vunpack.c.1.s8 %v653_v36 }
  0x32   :  { %427 = vmatpush3.bf16.msra.mxu0 %v89_v41  ;;  %447 = vmatpush3.bf16.msra.mxu1 %v232_v42  ;;  %v69_v49 = vand.u32 15, %v61_v43  ;;  %v70_v50 = vand.u32 15, %v62_v44  ;;  %v63_v51 = vunpack.c.2.s8 %v648_v30  ;;  %v64_v52 = vunpack.c.3.s8 %v648_v30 }
  0x33   :  { %428 = vmatprep.subr.bf16.mxu0 %v553_v0  ;;  %448 = vmatprep.subr.bf16.mxu1 %v553_v0  ;;  %v212_v53 = vand.u32 15, %v204_v47  ;;  %v213_v54 = vand.u32 15, %v205_v48  ;;  %v206_v55 = vunpack.c.2.s8 %v653_v36  ;;  %v207_v56 = vunpack.c.3.s8 %v653_v36 }
  0x34   :  { %v374_v57 = vadd.s32 4294967288, %v69_v49  ;;  %v375_v58 = vadd.s32 4294967288, %v70_v50  ;;  %v71_v59 = vand.u32 15, %v63_v51  ;;  %v72_v60 = vand.u32 15, %v64_v52 }
  0x35   :  { %v392_v61 = vadd.s32 4294967288, %v212_v53  ;;  %v393_v62 = vadd.s32 4294967288, %v213_v54  ;;  %v214_v63 = vand.u32 15, %v206_v55  ;;  %v215_v13 = vand.u32 15, %v207_v56 }
  0x36   :  { %429 = vmatpush3.bf16.msra.mxu0 %v90_v45  ;;  %449 = vmatpush3.bf16.msra.mxu1 %v233_v46  ;;  %v85_v14 = vcvt.s32.f32 %v374_v57  ;;  %v86_v15 = vcvt.s32.f32 %v375_v58  ;;  %v376_v16 = vadd.s32 4294967288, %v71_v59  ;;  %v377_v17 = vadd.s32 4294967288, %v72_v60 }
  0x37   :  { %430 = vmatprep.subr.bf16.mxu0 %v553_v0  ;;  %450 = vmatprep.subr.bf16.mxu1 %v553_v0  ;;  %v228_v18 = vcvt.s32.f32 %v392_v61  ;;  %v229_v19 = vcvt.s32.f32 %v393_v62  ;;  %v394_v20 = vadd.s32 4294967288, %v214_v63  ;;  %v395_v21 = vadd.s32 4294967288, %v215_v13 }
  0x38   :  { %v91_v22 = vpack.c.bf16 %v86_v15, %v85_v14  ;;  %v87_v23 = vcvt.s32.f32 %v376_v16  ;;  %v88_v24 = vcvt.s32.f32 %v377_v17  ;;  %v93_v26 = vshra.s32 %v57_v3, 4 }
  0x39   :  { %v234_v27 = vpack.c.bf16 %v229_v19, %v228_v18  ;;  %v230_v28 = vcvt.s32.f32 %v394_v20  ;;  %v231_v29 = vcvt.s32.f32 %v395_v21  ;;  %v94_v32 = vshra.s32 %v58_v4, 4 }
  0x3a   :  { %431 = vmatpush3.bf16.msra.mxu0 %v91_v22  ;;  %v92_v33 = vpack.c.bf16 %v88_v24, %v87_v23  ;;  %v101_v34 = vand.u32 15, %v93_v26  ;;  %v236_v35 = vshra.s32 %v200_v5, 4  ;;  %v237_v37 = vshra.s32 %v201_v6, 4 }
  0x3b   :  { %451 = vmatpush3.bf16.msra.mxu1 %v234_v27  ;;  %432 = vmatprep.subr.bf16.mxu0 %v553_v0  ;;  %v235_v38 = vpack.c.bf16 %v231_v29, %v230_v28  ;;  %v102_v3 = vand.u32 15, %v94_v32  ;;  %v95_v39 = vshra.s32 %v59_v8, 4  ;;  %v96_v4 = vshra.s32 %v60_v9, 4 }
  0x3c   :  { %452 = vmatprep.subr.bf16.mxu1 %v553_v0  ;;  %v378_v40 = vadd.s32 4294967288, %v101_v34  ;;  %v244_v41 = vand.u32 15, %v236_v35  ;;  %v245_v42 = vand.u32 15, %v237_v37  ;;  %v238_v5 = vshra.s32 %v202_v10, 4 }
  0x3d   :  { %v379_v6 = vadd.s32 4294967288, %v102_v3  ;;  %v103_v45 = vand.u32 15, %v95_v39  ;;  %v104_v46 = vand.u32 15, %v96_v4  ;;  %v239_v49 = vshra.s32 %v203_v11, 4 }
  0x3e   :  { %433 = vmatpush3.bf16.msra.mxu0 %v92_v33  ;;  %v117_v50 = vcvt.s32.f32 %v378_v40  ;;  %v396_v8 = vadd.s32 4294967288, %v244_v41  ;;  %v397_v53 = vadd.s32 4294967288, %v245_v42  ;;  %v246_v1 = vand.u32 15, %v238_v5 }
  0x3f   :  { %453 = vmatpush3.bf16.msra.mxu1 %v235_v38  ;;  %434 = vmatprep.subr.bf16.mxu0 %v553_v0  ;;  %v118_v9 = vcvt.s32.f32 %v379_v6  ;;  %v380_v54 = vadd.s32 4294967288, %v103_v45  ;;  %v381_v57 = vadd.s32 4294967288, %v104_v46  ;;  %v247_v58 = vand.u32 15, %v239_v49 }
  0x40   :  { %454 = vmatprep.subr.bf16.mxu1 %v553_v0  ;;  %v260_v10 = vcvt.s32.f32 %v396_v8  ;;  %v261_v59 = vcvt.s32.f32 %v397_v53  ;;  %v398_v60 = vadd.s32 4294967288, %v246_v1  ;;  %v97_v2 = vshra.s32 %v61_v43, 4  ;;  %v387_v8 = vld [vmem:[%s760_s3] ss:$0 sm:$0xff] }
  0x41   :  { %v125_v11 = vpack.c.bf16 %v118_v9, %v117_v50  ;;  %v119_v61 = vcvt.s32.f32 %v380_v54  ;;  %v120_v62 = vcvt.s32.f32 %v381_v57  ;;  %v399_v63 = vadd.s32 4294967288, %v247_v58  ;;  %v407_v57 = vld [vmem:[%s760_s3 + $0x1] ss:$0 sm:$0xff] }
  0x42   :  { %v268_v13 = vpack.c.bf16 %v261_v59, %v260_v10  ;;  %v262_v14 = vcvt.s32.f32 %v398_v60  ;;  %v98_v15 = vshra.s32 %v62_v44, 4  ;;  %v105_v16 = vand.u32 15, %v97_v2 }
  0x43   :  { %435 = vmatpush3.bf16.msra.mxu0 %v125_v11  ;;  %v126_v17 = vpack.c.bf16 %v120_v62, %v119_v61  ;;  %v263_v18 = vcvt.s32.f32 %v399_v63  ;;  %v240_v19 = vshra.s32 %v204_v47, 4  ;;  %v241_v20 = vshra.s32 %v205_v48, 4 }
  0x44   :  { %455 = vmatpush3.bf16.msra.mxu1 %v268_v13  ;;  %436 = vmatprep.subr.bf16.mxu0 %v553_v0  ;;  %v106_v43 = vand.u32 15, %v98_v15  ;;  %v382_v21 = vadd.s32 4294967288, %v105_v16  ;;  %v99_v22 = vshra.s32 %v63_v51, 4  ;;  %v100_v44 = vshra.s32 %v64_v52, 4 }
  0x45   :  { %456 = vmatprep.subr.bf16.mxu1 %v553_v0  ;;  %v269_v23 = vpack.c.bf16 %v263_v18, %v262_v14  ;;  %v248_v24 = vand.u32 15, %v240_v19  ;;  %v249_v26 = vand.u32 15, %v241_v20  ;;  %v242_v47 = vshra.s32 %v206_v55, 4 }
  0x46   :  { %v383_v48 = vadd.s32 4294967288, %v106_v43  ;;  %v121_v27 = vcvt.s32.f32 %v382_v21  ;;  %v107_v28 = vand.u32 15, %v99_v22  ;;  %v108_v29 = vand.u32 15, %v100_v44 }
  0x47   :  { %437 = vmatpush3.bf16.msra.mxu0 %v126_v17  ;;  %v400_v32 = vadd.s32 4294967288, %v248_v24  ;;  %v401_v33 = vadd.s32 4294967288, %v249_v26  ;;  %v243_v51 = vshra.s32 %v207_v56, 4  ;;  %v250_v30 = vand.u32 15, %v242_v47 }
  0x48   :  { %457 = vmatpush3.bf16.msra.mxu1 %v269_v23  ;;  %438 = vmatprep.subr.bf16.mxu0 %v553_v0  ;;  %v122_v52 = vcvt.s32.f32 %v383_v48  ;;  %v384_v34 = vadd.s32 4294967288, %v107_v28  ;;  %v385_v35 = vadd.s32 4294967288, %v108_v29  ;;  %v131_v45 = vpack.c.bf16 %v646_v25, %v620_v7  ;;  %v406_v7 = vld [vmem:[%s759_s2 + $0x1] ss:$0 sm:$0xff] }
  0x49   :  { %458 = vmatprep.subr.bf16.mxu1 %v553_v0  ;;  %v264_v55 = vcvt.s32.f32 %v400_v32  ;;  %v265_v37 = vcvt.s32.f32 %v401_v33  ;;  %v251_v38 = vand.u32 15, %v243_v51  ;;  %v402_v3 = vadd.s32 4294967288, %v250_v30 }
  0x4a   :  { %v127_v39 = vpack.c.bf16 %v122_v52, %v121_v27  ;;  %v123_v4 = vcvt.s32.f32 %v384_v34  ;;  %v124_v40 = vcvt.s32.f32 %v385_v35  ;;  %v274_v46 = vpack.c.bf16 %v650_v31, %v626_v12 }
  0x4b   :  { %v270_v41 = vpack.c.bf16 %v265_v37, %v264_v55  ;;  %v403_v42 = vadd.s32 4294967288, %v251_v38  ;;  %v266_v36 = vcvt.s32.f32 %v402_v3 }
  0x4c   :  { %439 = vmatpush3.bf16.msra.mxu0 %v127_v39  ;;  %v128_v56 = vpack.c.bf16 %v124_v40, %v123_v4 }
  0x4d   :  { %459 = vmatpush3.bf16.msra.mxu1 %v270_v41  ;;  %440 = vmatprep.subr.bf16.mxu0 %v553_v0  ;;  %v267_v5 = vcvt.s32.f32 %v403_v42 }
  0x4e   :  { %460 = vmatprep.subr.bf16.mxu1 %v553_v0  ;;  %v386_v0 = vld [vmem:[%s759_s2] ss:$0 sm:$0xff]  ;;  %s555_s2 = smov [#allocation8]  }
  0x4f   :  { %v271_v6 = vpack.c.bf16 %v267_v5, %v266_v36  ;;  %s355_s23 = sshll.u32 %s555_s2, 4  ;;  %s356_s23 = int_to_ptr.vmem [resolvable:$true] %s355_s23 }
  0x50   :  { %441 = vmatpush3.bf16.msra.mxu0 %v128_v56  ;;  %s519_s3 = scalar_lea.vmem %s356_s23, 256  ;;  %p524_p3 = scmp.lt.s32.totalorder %s356_s23, %s356_s23 }
  0x51   :  { %461 = vmatpush3.bf16.msra.mxu1 %v271_v6  ;;  %p520_p2 = scmp.ne.s32.totalorder %s356_s23, %s519_s3  ;;  %p525_p4 = scmp.lt.s32.totalorder %s519_s3, %s519_s3 }
  0x53   :  { %443 = vmatmul.mubr.bf16.vlgmr.msra.gmra.mrb[0].mxu0 %v131_v45  ;;  %p526_p5 = por %p525_p4, %p524_p3 }
  0x54   :  { %463 = vmatmul.mubr.bf16.vlgmr.msra.gmra.mrb[0].mxu1 %v274_v46 }
  0x55   :  { %p527_p6 = pnand %p526_p5, %p520_p2 }
  0xb7   :  { %v174_v49 = vpop.xlane.xlu0 %173  ;;  %v317_v50 = vpop.xlane.xlu1 %316 }
  0xb8   :  { %v194_v31 = vmul.f32 %v387_v8, %v174_v49  ;;  %v337_v63 = vmul.f32 %v407_v57, %v317_v50 }
  0xbb   :  { %v176_v53 = vpop.xlane.xlu0 %175  ;;  %v319_v12 = vpop.xlane.xlu1 %318 }
  0xbc   :  { %v195_v58 = vmul.f32 %v387_v8, %v176_v53  ;;  %v338_v17 = vmul.f32 %v407_v57, %v319_v12 }
 0x126   :  { %v166_v25 = vpop.f32.mrb[0].mxu0 }
 0x127   :  { %v186_v1 = vmul.f32 %v386_v0, %v166_v25  ;;  %v309_v9 = vpop.f32.mrb[0].mxu1  ;;  %v444_v54 = vpop.f32.mrb[1].mxu0 }
 0x128   :  { %v329_v10 = vmul.f32 %v406_v7, %v309_v9  ;;  %v464_v59 = vpop.f32.mrb[1].mxu1  ;;  %v169_v60 = vpop.f32.mrb[2].mxu0 }
 0x129   :  { %v196_v2 = vadd.f32 %v194_v31, %v186_v1  ;;  %v312_v11 = vpop.f32.mrb[2].mxu1  ;;  %v187_v61 = vmul.f32 %v386_v0, %v169_v60  ;;  %v445_v62 = vpop.f32.mrb[3].mxu0 }
 0x12a   :  { %v465_v13 = vpop.f32.mrb[3].mxu1  ;;  %v330_v15 = vmul.f32 %v406_v7, %v312_v11 }
 0x12b   :  { %v331_v14 = vadd.f32 %v329_v10, %v196_v2  ;;  %v197_v16 = vadd.f32 %v195_v58, %v187_v61 }
 0x12d   :  { %v339_v18 = vadd.f32 %v337_v63, %v331_v14  ;;  %v332_v19 = vadd.f32 %v330_v15, %v197_v16 }
 0x12f   :  { %348 = vst [vmem:[#allocation8] sm:$0xff] %v339_v18  ;;  %v340_v20 = vadd.f32 %v338_v17, %v332_v19 }
 0x131   :  { %349 = vst [vmem:[#allocation8 + $0x8] sm:$0xff] %v340_v20 }
 0x132   :  { %530 = shalt.err (!%p527_p6)
}
 0x133   :  { %s531_s26 = scalar_lea.hbm %s761_s4, 256 }
 0x134   :  { %p532_p7 = scmp.ne.s32.totalorder %s761_s4, %s531_s26  ;;  %p535_p8 = scmp.lt.u32.totalorder %s531_s26, %s761_s4 }
 0x136   :  { %p537_p9 = pnand %p535_p8, %p532_p7 }
 0x138   :  { %540 = shalt.err (!%p537_p9)
}
 0x139   :  { %361 = dma.vmem_to_hbm [thread:$0]  %s356_s23, 256, %s761_s4, [#allocation5], %s551_s0, %s551_s0, %s552_s13  }
 0x13a   :  { %545 = dma.done.wait [#allocation5], 256  }
 0x13b   :  { %546 = vsyncadd [#allocation5], 4294967040 }
 0x13c   :  { %365 = vsyncpa [#allocation4], 1 }
 0x13d   :  { %366 = vsyncpa [#allocation7], 1 }
 0x13e   :  { %367 = vsyncpa [#allocation5], 1 }

</bundles_post_ra>
